<compile_context>
chip_gen: v5e
topology: v5e:2x2
jax: 0.10.0
libtpu: 0.0.40
codegen_flags: <defaults>
</compile_context>

<pallas_src>
import jax
import jax.numpy as jnp
from jax.experimental import pallas as pl
from jax.experimental.pallas import tpu as pltpu

NEG_SLOPE = 0.01  # F.leaky_relu default
BN_EPS = 1e-5


def _round_up(n, m):
    return ((n + m - 1) // m) * m


def _leaky_relu(x):
    # one vmul + one vmax (valid for 0 < NEG_SLOPE < 1)
    return jnp.maximum(x, NEG_SLOPE * x)


# ---------------------------------------------------------------------------
# Kernel: 6 linear layers (3 of them split over their concatenated inputs).
# All BN scale/shift already folded into the (bf16) weights / (f32) biases.
# ---------------------------------------------------------------------------
def resnet_mlp_kernel(
    x_ref,
    w1_ref, b1_ref,
    w2a_ref, w2b_ref, b2_ref,
    w20_ref, b20_ref,
    w3a_ref, w3b_ref, b3_ref,
    w30_ref, b30_ref,
    w5a_ref, w5b_ref, b5_ref,
    out_ref,
):
    f32 = jnp.float32
    bf16 = jnp.bfloat16

    x = x_ref[...]  # (TB, F) bf16

    # x1 = leaky_relu(dense1(bn1(x)))
    h1 = _leaky_relu(jnp.dot(x, w1_ref[...], preferred_element_type=f32) + b1_ref[...])
    h1b = h1.astype(bf16)

    # x2 = leaky_relu(dense2(bn2(cat[x, x1])))   (cat realized as split matmuls)
    a2 = (jnp.dot(x, w2a_ref[...], preferred_element_type=f32)
          + jnp.dot(h1b, w2b_ref[...], preferred_element_type=f32)
          + b2_ref[...])
    h2b = _leaky_relu(a2).astype(bf16)

    # x2 = leaky_relu(dense20(bn20(x2)))
    h2 = _leaky_relu(jnp.dot(h2b, w20_ref[...], preferred_element_type=f32) + b20_ref[...])
    h2b = h2.astype(bf16)

    # x3 = leaky_relu(dense3(bn3(cat[x1, x2])))
    a3 = (jnp.dot(h1b, w3a_ref[...], preferred_element_type=f32)
          + jnp.dot(h2b, w3b_ref[...], preferred_element_type=f32)
          + b3_ref[...])
    h3b = _leaky_relu(a3).astype(bf16)

    # x3 = leaky_relu(dense30(bn30(x3)))
    h3 = _leaky_relu(jnp.dot(h3b, w30_ref[...], preferred_element_type=f32) + b30_ref[...])
    h3b = h3.astype(bf16)

    # out = dense5(bn4(cat[x2, x3]))
    out = (jnp.dot(h2b, w5a_ref[...], preferred_element_type=f32)
           + jnp.dot(h3b, w5b_ref[...], preferred_element_type=f32)
           + b5_ref[...])
    out_ref[...] = out


# ---------------------------------------------------------------------------
# Parameter setup (glue): weight_norm materialization, BN folding, padding.
# ---------------------------------------------------------------------------
def weight_norm_effective(v, g):
    # PyTorch weight_norm default dim=0: per output row, W = g * v / ||v||_row.
    norm = jnp.sqrt(jnp.sum(v * v, axis=1, keepdims=True))
    return v * (g[:, None] / norm)


def bn_affine(gamma, beta, running_mean, running_var, eps=BN_EPS):
    scale = gamma / jnp.sqrt(running_var + eps)
    shift = beta - running_mean * scale
    return scale, shift


def fold_bn_linear(bn_prm, lin_prm):
    """Fold inference BN (scale s, shift t) into the following linear.

    Returns W_folded with shape (in, out) and b_folded (out,), so that
      linear(bn(x)) == x @ W_folded + b_folded.
    """
    s, t = bn_affine(*bn_prm)
    v, g, b = lin_prm
    wt = weight_norm_effective(v, g).T       # (in, out)
    w_folded = wt * s[:, None]
    b_folded = t @ wt + b
    return w_folded, b_folded


def _pad2(a, rows, cols):
    return jnp.pad(a, ((0, rows - a.shape[0]), (0, cols - a.shape[1])))


def make_params(key, num_features, num_targets, hidden_size):
    F_, H, T = num_features, hidden_size, num_targets
    layout = [
        ("bn1", "bn", F_), ("l1", "lin", (F_, H)),
        ("bn2", "bn", F_ + H), ("l2", "lin", (F_ + H, H)),
        ("bn20", "bn", H), ("l20", "lin", (H, H)),
        ("bn3", "bn", 2 * H), ("l3", "lin", (2 * H, H)),
        ("bn30", "bn", H), ("l30", "lin", (H, H)),
        ("bn4", "bn", 2 * H), ("l5", "lin", (2 * H, T)),
    ]
    p = {}
    keys = jax.random.split(key, len(layout))
    for k, (name, kind, shp) in zip(keys, layout):
        sub = jax.random.split(k, 4)
        if kind == "bn":
            n = shp
            gamma = 1.0 + 0.05 * jax.random.normal(sub[0], (n,), jnp.float32)
            beta = 0.05 * jax.random.normal(sub[1], (n,), jnp.float32)
            mean = 0.1 * jax.random.normal(sub[2], (n,), jnp.float32)
            var = jnp.abs(1.0 + 0.1 * jax.random.normal(sub[3], (n,), jnp.float32))
            p[name] = (gamma, beta, mean, var)
        else:
            fan_in, fan_out = shp
            v = jax.random.normal(sub[0], (fan_out, fan_in), jnp.float32) / jnp.sqrt(fan_in)
            g = jnp.sqrt(jnp.sum(v * v, axis=1)) * (
                1.0 + 0.01 * jax.random.normal(sub[1], (fan_out,), jnp.float32))
            b = 0.1 * jax.random.normal(sub[2], (fan_out,), jnp.float32)
            p[name] = (v, g, b)
    return p


def model_forward(x, params, num_features, num_targets, hidden_size):
    F_, H, T = num_features, hidden_size, num_targets
    HP = _round_up(H, 128)   # lane-dense hidden width
    TP = _round_up(T, 128)   # lane-dense output width
    B = x.shape[0]
    # Batch tile: big enough to feed the MXU in M when B is large, multiple of 8 always.
    TB = 256 if B >= 256 else _round_up(B, 8)
    PB = _round_up(B, TB)

    # Fold each BN into the following linear; (in, out) layout.
    w1, b1 = fold_bn_linear(params["bn1"], params["l1"])        # (F, H)
    w2, b2 = fold_bn_linear(params["bn2"], params["l2"])        # (F+H, H)
    w20, b20 = fold_bn_linear(params["bn20"], params["l20"])    # (H, H)
    w3, b3 = fold_bn_linear(params["bn3"], params["l3"])        # (2H, H)
    w30, b30 = fold_bn_linear(params["bn30"], params["l30"])    # (H, H)
    w5, b5 = fold_bn_linear(params["bn4"], params["l5"])        # (2H, T)

    # Split "cat" weights along the input dim (removes concats from the kernel).
    w2a, w2b = w2[:F_], w2[F_:]
    w3a, w3b = w3[:H], w3[H:]
    w5a, w5b = w5[:H], w5[H:]

    bf16 = jnp.bfloat16
    W1 = _pad2(w1, F_, HP).astype(bf16)
    W2a = _pad2(w2a, F_, HP).astype(bf16)
    W2b = _pad2(w2b, HP, HP).astype(bf16)
    W20 = _pad2(w20, HP, HP).astype(bf16)
    W3a = _pad2(w3a, HP, HP).astype(bf16)
    W3b = _pad2(w3b, HP, HP).astype(bf16)
    W30 = _pad2(w30, HP, HP).astype(bf16)
    W5a = _pad2(w5a, HP, TP).astype(bf16)
    W5b = _pad2(w5b, HP, TP).astype(bf16)

    B1 = _pad2(b1[None, :], 1, HP)
    B2 = _pad2(b2[None, :], 1, HP)
    B20 = _pad2(b20[None, :], 1, HP)
    B3 = _pad2(b3[None, :], 1, HP)
    B30 = _pad2(b30[None, :], 1, HP)
    B5 = _pad2(b5[None, :], 1, TP)

    xp = jnp.pad(x, ((0, PB - B), (0, 0))).astype(bf16)

    args = (xp,
            W1, B1,
            W2a, W2b, B2,
            W20, B20,
            W3a, W3b, B3,
            W30, B30,
            W5a, W5b, B5)

    x_spec = pl.BlockSpec((TB, F_), lambda i: (i, 0))
    out_spec = pl.BlockSpec((TB, TP), lambda i: (i, 0))

    def resident(a):
        # Same block index every grid step -> stays VMEM-resident (loaded once).
        return pl.BlockSpec(a.shape, lambda i: (0, 0))

    in_specs = [x_spec] + [resident(a) for a in args[1:]]

    out = pl.pallas_call(
        resnet_mlp_kernel,
        out_shape=jax.ShapeDtypeStruct((PB, TP), jnp.float32),
        grid=(PB // TB,),
        in_specs=in_specs,
        out_specs=out_spec,
        compiler_params=pltpu.CompilerParams(
            dimension_semantics=("parallel",),      # split batch tiles across TCs (v7x)
            vmem_limit_bytes=32 * 1024 * 1024,      # explicit, safe for v7x's 64 MiB VMEM
        ),
    )(*args)
    return out[:B, :T]


# ---------------------------------------------------------------------------
# Pure-JAX f32 reference mirroring the PyTorch forward (eval mode).
# ---------------------------------------------------------------------------
def reference_forward(x, params):
    def bn(x, prm):
        s, t = bn_affine(*prm)
        return x * s[None, :] + t[None, :]

    def lin(x, prm):
        v, g, b = prm
        w = weight_norm_effective(v, g)
        return x @ w.T + b

    x1 = bn(x, params["bn1"])
    x1 = _leaky_relu(lin(x1, params["l1"]))
    xc = jnp.concatenate([x, x1], axis=1)
    x2 = _leaky_relu(lin(bn(xc, params["bn2"]), params["l2"]))
    x2 = _leaky_relu(lin(bn(x2, params["bn20"]), params["l20"]))
    xc = jnp.concatenate([x1, x2], axis=1)
    x3 = _leaky_relu(lin(bn(xc, params["bn3"]), params["l3"]))
    x3 = _leaky_relu(lin(bn(x3, params["bn30"]), params["l30"]))
    xc = jnp.concatenate([x2, x3], axis=1)
    return lin(bn(xc, params["bn4"]), params["l5"])


if __name__ == "__main__":
    num_features, num_targets, hidden_size = 32, 16, 64
    batch = 8

    key = jax.random.PRNGKey(0)
    kx, kp = jax.random.split(key)
    x = jax.random.normal(kx, (batch, num_features), jnp.float32)
    params = make_params(kp, num_features, num_targets, hidden_size)

    out = model_forward(x, params, num_features, num_targets, hidden_size)
    out = jax.block_until_ready(out)

    ref = reference_forward(x, params)
    assert out.shape == (batch, num_targets)
    # bf16 matmul operands (f32 accumulation) -> loose tolerance vs the f32 reference.
    assert jnp.allclose(out, ref, atol=5e-2, rtol=5e-2), (
        f"mismatch vs reference, max abs err = {float(jnp.max(jnp.abs(out - ref)))}")

    print("KERNEL_OK")
</pallas_src>

<mosaic_0001>
module attributes {stable_mosaic.version = 11 : i64} {
  func.func @resnet_mlp_kernel(%arg0: i32, %arg1: memref<8x32xbf16, #tpu.memory_space<vmem>>, %arg2: memref<32x128xbf16, #tpu.memory_space<vmem>>, %arg3: memref<1x128xf32, #tpu.memory_space<vmem>>, %arg4: memref<32x128xbf16, #tpu.memory_space<vmem>>, %arg5: memref<128x128xbf16, #tpu.memory_space<vmem>>, %arg6: memref<1x128xf32, #tpu.memory_space<vmem>>, %arg7: memref<128x128xbf16, #tpu.memory_space<vmem>>, %arg8: memref<1x128xf32, #tpu.memory_space<vmem>>, %arg9: memref<128x128xbf16, #tpu.memory_space<vmem>>, %arg10: memref<128x128xbf16, #tpu.memory_space<vmem>>, %arg11: memref<1x128xf32, #tpu.memory_space<vmem>>, %arg12: memref<128x128xbf16, #tpu.memory_space<vmem>>, %arg13: memref<1x128xf32, #tpu.memory_space<vmem>>, %arg14: memref<128x128xbf16, #tpu.memory_space<vmem>>, %arg15: memref<128x128xbf16, #tpu.memory_space<vmem>>, %arg16: memref<1x128xf32, #tpu.memory_space<vmem>>, %arg17: memref<8x128xf32, #tpu.memory_space<vmem>>) attributes {dimension_semantics = [#tpu.dimension_semantics<parallel>], iteration_bounds = array<i64: 1>, scalar_prefetch = 0 : i64, scratch_operands = 0 : i64, tpu.core_type = #tpu.core_type<tc>, window_params = [{transform_indices = @transform_0, window_bounds = array<i64: 8, 32>}, {pipeline_mode = #tpu.pipeline_mode<synchronous>, transform_indices = @transform_1, window_bounds = array<i64: 32, 128>}, {pipeline_mode = #tpu.pipeline_mode<synchronous>, transform_indices = @transform_2, window_bounds = array<i64: 1, 128>}, {pipeline_mode = #tpu.pipeline_mode<synchronous>, transform_indices = @transform_3, window_bounds = array<i64: 32, 128>}, {pipeline_mode = #tpu.pipeline_mode<synchronous>, transform_indices = @transform_4, window_bounds = array<i64: 128, 128>}, {pipeline_mode = #tpu.pipeline_mode<synchronous>, transform_indices = @transform_5, window_bounds = array<i64: 1, 128>}, {pipeline_mode = #tpu.pipeline_mode<synchronous>, transform_indices = @transform_6, window_bounds = array<i64: 128, 128>}, {pipeline_mode = #tpu.pipeline_mode<synchronous>, transform_indices = @transform_7, window_bounds = array<i64: 1, 128>}, {pipeline_mode = #tpu.pipeline_mode<synchronous>, transform_indices = @transform_8, window_bounds = array<i64: 128, 128>}, {pipeline_mode = #tpu.pipeline_mode<synchronous>, transform_indices = @transform_9, window_bounds = array<i64: 128, 128>}, {pipeline_mode = #tpu.pipeline_mode<synchronous>, transform_indices = @transform_10, window_bounds = array<i64: 1, 128>}, {pipeline_mode = #tpu.pipeline_mode<synchronous>, transform_indices = @transform_11, window_bounds = array<i64: 128, 128>}, {pipeline_mode = #tpu.pipeline_mode<synchronous>, transform_indices = @transform_12, window_bounds = array<i64: 1, 128>}, {pipeline_mode = #tpu.pipeline_mode<synchronous>, transform_indices = @transform_13, window_bounds = array<i64: 128, 128>}, {pipeline_mode = #tpu.pipeline_mode<synchronous>, transform_indices = @transform_14, window_bounds = array<i64: 128, 128>}, {pipeline_mode = #tpu.pipeline_mode<synchronous>, transform_indices = @transform_15, window_bounds = array<i64: 1, 128>}, {transform_indices = @transform_16, window_bounds = array<i64: 8, 128>}]} {
    %c0 = arith.constant 0 : index
    %c0_0 = arith.constant 0 : index
    %0 = vector.load %arg1[%c0, %c0_0] : memref<8x32xbf16, #tpu.memory_space<vmem>>, vector<8x32xbf16>
    %c0_1 = arith.constant 0 : index
    %c0_2 = arith.constant 0 : index
    %1 = vector.load %arg2[%c0_1, %c0_2] : memref<32x128xbf16, #tpu.memory_space<vmem>>, vector<32x128xbf16>
    %cst = arith.constant dense<0.000000e+00> : vector<8x128xf32>
    %2 = tpu.matmul %0, %1, %cst {dimension_numbers = #tpu.dot_dimension_numbers<[1], [0], [0], [1], [0, 0, 1, 1], [], []>} : vector<8x32xbf16>, vector<32x128xbf16>, vector<8x128xf32> -> vector<8x128xf32>
    %c0_3 = arith.constant 0 : index
    %c0_4 = arith.constant 0 : index
    %3 = vector.load %arg3[%c0_3, %c0_4] : memref<1x128xf32, #tpu.memory_space<vmem>>, vector<1x128xf32>
    %4 = vector.broadcast %3 : vector<1x128xf32> to vector<8x128xf32>
    %5 = arith.addf %2, %4 : vector<8x128xf32>
    %cst_5 = arith.constant 0.00999999977 : f32
    %6 = vector.broadcast %cst_5 : f32 to vector<8x128xf32>
    %7 = arith.mulf %6, %5 : vector<8x128xf32>
    %8 = arith.maximumf %5, %7 : vector<8x128xf32>
    %9 = arith.truncf %8 : vector<8x128xf32> to vector<8x128xbf16>
    %c0_6 = arith.constant 0 : index
    %c0_7 = arith.constant 0 : index
    %10 = vector.load %arg4[%c0_6, %c0_7] : memref<32x128xbf16, #tpu.memory_space<vmem>>, vector<32x128xbf16>
    %cst_8 = arith.constant dense<0.000000e+00> : vector<8x128xf32>
    %11 = tpu.matmul %0, %10, %cst_8 {dimension_numbers = #tpu.dot_dimension_numbers<[1], [0], [0], [1], [0, 0, 1, 1], [], []>} : vector<8x32xbf16>, vector<32x128xbf16>, vector<8x128xf32> -> vector<8x128xf32>
    %c0_9 = arith.constant 0 : index
    %c0_10 = arith.constant 0 : index
    %12 = vector.load %arg5[%c0_9, %c0_10] : memref<128x128xbf16, #tpu.memory_space<vmem>>, vector<128x128xbf16>
    %cst_11 = arith.constant dense<0.000000e+00> : vector<8x128xf32>
    %13 = tpu.matmul %9, %12, %cst_11 {dimension_numbers = #tpu.dot_dimension_numbers<[1], [0], [0], [1], [0, 0, 1, 1], [], []>} : vector<8x128xbf16>, vector<128x128xbf16>, vector<8x128xf32> -> vector<8x128xf32>
    %14 = arith.addf %11, %13 : vector<8x128xf32>
    %c0_12 = arith.constant 0 : index
    %c0_13 = arith.constant 0 : index
    %15 = vector.load %arg6[%c0_12, %c0_13] : memref<1x128xf32, #tpu.memory_space<vmem>>, vector<1x128xf32>
    %16 = vector.broadcast %15 : vector<1x128xf32> to vector<8x128xf32>
    %17 = arith.addf %14, %16 : vector<8x128xf32>
    %cst_14 = arith.constant 0.00999999977 : f32
    %18 = vector.broadcast %cst_14 : f32 to vector<8x128xf32>
    %19 = arith.mulf %18, %17 : vector<8x128xf32>
    %20 = arith.maximumf %17, %19 : vector<8x128xf32>
    %21 = arith.truncf %20 : vector<8x128xf32> to vector<8x128xbf16>
    %c0_15 = arith.constant 0 : index
    %c0_16 = arith.constant 0 : index
    %22 = vector.load %arg7[%c0_15, %c0_16] : memref<128x128xbf16, #tpu.memory_space<vmem>>, vector<128x128xbf16>
    %cst_17 = arith.constant dense<0.000000e+00> : vector<8x128xf32>
    %23 = tpu.matmul %21, %22, %cst_17 {dimension_numbers = #tpu.dot_dimension_numbers<[1], [0], [0], [1], [0, 0, 1, 1], [], []>} : vector<8x128xbf16>, vector<128x128xbf16>, vector<8x128xf32> -> vector<8x128xf32>
    %c0_18 = arith.constant 0 : index
    %c0_19 = arith.constant 0 : index
    %24 = vector.load %arg8[%c0_18, %c0_19] : memref<1x128xf32, #tpu.memory_space<vmem>>, vector<1x128xf32>
    %25 = vector.broadcast %24 : vector<1x128xf32> to vector<8x128xf32>
    %26 = arith.addf %23, %25 : vector<8x128xf32>
    %cst_20 = arith.constant 0.00999999977 : f32
    %27 = vector.broadcast %cst_20 : f32 to vector<8x128xf32>
    %28 = arith.mulf %27, %26 : vector<8x128xf32>
    %29 = arith.maximumf %26, %28 : vector<8x128xf32>
    %30 = arith.truncf %29 : vector<8x128xf32> to vector<8x128xbf16>
    %c0_21 = arith.constant 0 : index
    %c0_22 = arith.constant 0 : index
    %31 = vector.load %arg9[%c0_21, %c0_22] : memref<128x128xbf16, #tpu.memory_space<vmem>>, vector<128x128xbf16>
    %cst_23 = arith.constant dense<0.000000e+00> : vector<8x128xf32>
    %32 = tpu.matmul %9, %31, %cst_23 {dimension_numbers = #tpu.dot_dimension_numbers<[1], [0], [0], [1], [0, 0, 1, 1], [], []>} : vector<8x128xbf16>, vector<128x128xbf16>, vector<8x128xf32> -> vector<8x128xf32>
    %c0_24 = arith.constant 0 : index
    %c0_25 = arith.constant 0 : index
    %33 = vector.load %arg10[%c0_24, %c0_25] : memref<128x128xbf16, #tpu.memory_space<vmem>>, vector<128x128xbf16>
    %cst_26 = arith.constant dense<0.000000e+00> : vector<8x128xf32>
    %34 = tpu.matmul %30, %33, %cst_26 {dimension_numbers = #tpu.dot_dimension_numbers<[1], [0], [0], [1], [0, 0, 1, 1], [], []>} : vector<8x128xbf16>, vector<128x128xbf16>, vector<8x128xf32> -> vector<8x128xf32>
    %35 = arith.addf %32, %34 : vector<8x128xf32>
    %c0_27 = arith.constant 0 : index
    %c0_28 = arith.constant 0 : index
    %36 = vector.load %arg11[%c0_27, %c0_28] : memref<1x128xf32, #tpu.memory_space<vmem>>, vector<1x128xf32>
    %37 = vector.broadcast %36 : vector<1x128xf32> to vector<8x128xf32>
    %38 = arith.addf %35, %37 : vector<8x128xf32>
    %cst_29 = arith.constant 0.00999999977 : f32
    %39 = vector.broadcast %cst_29 : f32 to vector<8x128xf32>
    %40 = arith.mulf %39, %38 : vector<8x128xf32>
    %41 = arith.maximumf %38, %40 : vector<8x128xf32>
    %42 = arith.truncf %41 : vector<8x128xf32> to vector<8x128xbf16>
    %c0_30 = arith.constant 0 : index
    %c0_31 = arith.constant 0 : index
    %43 = vector.load %arg12[%c0_30, %c0_31] : memref<128x128xbf16, #tpu.memory_space<vmem>>, vector<128x128xbf16>
    %cst_32 = arith.constant dense<0.000000e+00> : vector<8x128xf32>
    %44 = tpu.matmul %42, %43, %cst_32 {dimension_numbers = #tpu.dot_dimension_numbers<[1], [0], [0], [1], [0, 0, 1, 1], [], []>} : vector<8x128xbf16>, vector<128x128xbf16>, vector<8x128xf32> -> vector<8x128xf32>
    %c0_33 = arith.constant 0 : index
    %c0_34 = arith.constant 0 : index
    %45 = vector.load %arg13[%c0_33, %c0_34] : memref<1x128xf32, #tpu.memory_space<vmem>>, vector<1x128xf32>
    %46 = vector.broadcast %45 : vector<1x128xf32> to vector<8x128xf32>
    %47 = arith.addf %44, %46 : vector<8x128xf32>
    %cst_35 = arith.constant 0.00999999977 : f32
    %48 = vector.broadcast %cst_35 : f32 to vector<8x128xf32>
    %49 = arith.mulf %48, %47 : vector<8x128xf32>
    %50 = arith.maximumf %47, %49 : vector<8x128xf32>
    %51 = arith.truncf %50 : vector<8x128xf32> to vector<8x128xbf16>
    %c0_36 = arith.constant 0 : index
    %c0_37 = arith.constant 0 : index
    %52 = vector.load %arg14[%c0_36, %c0_37] : memref<128x128xbf16, #tpu.memory_space<vmem>>, vector<128x128xbf16>
    %cst_38 = arith.constant dense<0.000000e+00> : vector<8x128xf32>
    %53 = tpu.matmul %30, %52, %cst_38 {dimension_numbers = #tpu.dot_dimension_numbers<[1], [0], [0], [1], [0, 0, 1, 1], [], []>} : vector<8x128xbf16>, vector<128x128xbf16>, vector<8x128xf32> -> vector<8x128xf32>
    %c0_39 = arith.constant 0 : index
    %c0_40 = arith.constant 0 : index
    %54 = vector.load %arg15[%c0_39, %c0_40] : memref<128x128xbf16, #tpu.memory_space<vmem>>, vector<128x128xbf16>
    %cst_41 = arith.constant dense<0.000000e+00> : vector<8x128xf32>
    %55 = tpu.matmul %51, %54, %cst_41 {dimension_numbers = #tpu.dot_dimension_numbers<[1], [0], [0], [1], [0, 0, 1, 1], [], []>} : vector<8x128xbf16>, vector<128x128xbf16>, vector<8x128xf32> -> vector<8x128xf32>
    %56 = arith.addf %53, %55 : vector<8x128xf32>
    %c0_42 = arith.constant 0 : index
    %c0_43 = arith.constant 0 : index
    %57 = vector.load %arg16[%c0_42, %c0_43] : memref<1x128xf32, #tpu.memory_space<vmem>>, vector<1x128xf32>
    %58 = vector.broadcast %57 : vector<1x128xf32> to vector<8x128xf32>
    %59 = arith.addf %56, %58 : vector<8x128xf32>
    %c0_44 = arith.constant 0 : index
    %c0_45 = arith.constant 0 : index
    %60 = vector.load %arg17[%c0_44, %c0_45] : memref<8x128xf32, #tpu.memory_space<vmem>>, vector<8x128xf32>
    tpu.vector_store %arg17[%c0_44, %c0_45], %59 {strides = array<i32>} : memref<8x128xf32, #tpu.memory_space<vmem>>, vector<8x128xf32>,
    return
  }
  func.func @transform_0(%arg0: i32) -> (i32, i32) {
    %c0_i32 = arith.constant 0 : i32
    %c0_i32_0 = arith.constant 0 : i32
    return %arg0, %c0_i32 : i32, i32
  }
  func.func @transform_1(%arg0: i32) -> (i32, i32) {
    %c0_i32 = arith.constant 0 : i32
    %c0_i32_0 = arith.constant 0 : i32
    %c0_i32_1 = arith.constant 0 : i32
    return %c0_i32, %c0_i32_0 : i32, i32
  }
  func.func @transform_2(%arg0: i32) -> (i32, i32) {
    %c0_i32 = arith.constant 0 : i32
    %c0_i32_0 = arith.constant 0 : i32
    %c0_i32_1 = arith.constant 0 : i32
    return %c0_i32, %c0_i32_0 : i32, i32
  }
  func.func @transform_3(%arg0: i32) -> (i32, i32) {
    %c0_i32 = arith.constant 0 : i32
    %c0_i32_0 = arith.constant 0 : i32
    %c0_i32_1 = arith.constant 0 : i32
    return %c0_i32, %c0_i32_0 : i32, i32
  }
  func.func @transform_4(%arg0: i32) -> (i32, i32) {
    %c0_i32 = arith.constant 0 : i32
    %c0_i32_0 = arith.constant 0 : i32
    %c0_i32_1 = arith.constant 0 : i32
    return %c0_i32, %c0_i32_0 : i32, i32
  }
  func.func @transform_5(%arg0: i32) -> (i32, i32) {
    %c0_i32 = arith.constant 0 : i32
    %c0_i32_0 = arith.constant 0 : i32
    %c0_i32_1 = arith.constant 0 : i32
    return %c0_i32, %c0_i32_0 : i32, i32
  }
  func.func @transform_6(%arg0: i32) -> (i32, i32) {
    %c0_i32 = arith.constant 0 : i32
    %c0_i32_0 = arith.constant 0 : i32
    %c0_i32_1 = arith.constant 0 : i32
    return %c0_i32, %c0_i32_0 : i32, i32
  }
  func.func @transform_7(%arg0: i32) -> (i32, i32) {
    %c0_i32 = arith.constant 0 : i32
    %c0_i32_0 = arith.constant 0 : i32
    %c0_i32_1 = arith.constant 0 : i32
    return %c0_i32, %c0_i32_0 : i32, i32
  }
  func.func @transform_8(%arg0: i32) -> (i32, i32) {
    %c0_i32 = arith.constant 0 : i32
    %c0_i32_0 = arith.constant 0 : i32
    %c0_i32_1 = arith.constant 0 : i32
    return %c0_i32, %c0_i32_0 : i32, i32
  }
  func.func @transform_9(%arg0: i32) -> (i32, i32) {
    %c0_i32 = arith.constant 0 : i32
    %c0_i32_0 = arith.constant 0 : i32
    %c0_i32_1 = arith.constant 0 : i32
    return %c0_i32, %c0_i32_0 : i32, i32
  }
  func.func @transform_10(%arg0: i32) -> (i32, i32) {
    %c0_i32 = arith.constant 0 : i32
    %c0_i32_0 = arith.constant 0 : i32
    %c0_i32_1 = arith.constant 0 : i32
    return %c0_i32, %c0_i32_0 : i32, i32
  }
  func.func @transform_11(%arg0: i32) -> (i32, i32) {
    %c0_i32 = arith.constant 0 : i32
    %c0_i32_0 = arith.constant 0 : i32
    %c0_i32_1 = arith.constant 0 : i32
    return %c0_i32, %c0_i32_0 : i32, i32
  }
  func.func @transform_12(%arg0: i32) -> (i32, i32) {
    %c0_i32 = arith.constant 0 : i32
    %c0_i32_0 = arith.constant 0 : i32
    %c0_i32_1 = arith.constant 0 : i32
    return %c0_i32, %c0_i32_0 : i32, i32
  }
  func.func @transform_13(%arg0: i32) -> (i32, i32) {
    %c0_i32 = arith.constant 0 : i32
    %c0_i32_0 = arith.constant 0 : i32
    %c0_i32_1 = arith.constant 0 : i32
    return %c0_i32, %c0_i32_0 : i32, i32
  }
  func.func @transform_14(%arg0: i32) -> (i32, i32) {
    %c0_i32 = arith.constant 0 : i32
    %c0_i32_0 = arith.constant 0 : i32
    %c0_i32_1 = arith.constant 0 : i32
    return %c0_i32, %c0_i32_0 : i32, i32
  }
  func.func @transform_15(%arg0: i32) -> (i32, i32) {
    %c0_i32 = arith.constant 0 : i32
    %c0_i32_0 = arith.constant 0 : i32
    %c0_i32_1 = arith.constant 0 : i32
    return %c0_i32, %c0_i32_0 : i32, i32
  }
  func.func @transform_16(%arg0: i32) -> (i32, i32) {
    %c0_i32 = arith.constant 0 : i32
    %c0_i32_0 = arith.constant 0 : i32
    return %arg0, %c0_i32 : i32, i32
  }
}

</mosaic_0001>

<bundles_post_ra>
// kernel: tpu_custom_call.1
= control target key start
LH: loop header
LB: loop body
LE: loop exit
PB: predicated region body
PF: predicated region fallthrough
CT: control target
= control target key end

     0   :  { %s1653_s0 = inlined_call_operand.hbm [shape: bf16[8,32], index: 0, kind: input, shape index: {}]   ;;  %s1654_s1 = inlined_call_operand.hbm [shape: bf16[32,128], index: 1, kind: input, shape index: {}]   ;;  %s1655_s2 = inlined_call_operand.vmem [shape: f32[1,128], index: 2, kind: input, shape index: {}]   ;;  %s1656_s3 = inlined_call_operand.hbm [shape: bf16[32,128], index: 3, kind: input, shape index: {}]   ;;  %s1657_s4 = inlined_call_operand.hbm [shape: bf16[128,128], index: 4, kind: input, shape index: {}]   ;;  %s1658_s5 = inlined_call_operand.vmem [shape: f32[1,128], index: 5, kind: input, shape index: {}]   ;;  %s1659_s6 = inlined_call_operand.hbm [shape: bf16[128,128], index: 6, kind: input, shape index: {}]   ;;  %s1660_s7 = inlined_call_operand.vmem [shape: f32[1,128], index: 7, kind: input, shape index: {}]   ;;  %s1661_s8 = inlined_call_operand.hbm [shape: bf16[128,128], index: 8, kind: input, shape index: {}]   ;;  %s1662_s9 = inlined_call_operand.hbm [shape: bf16[128,128], index: 9, kind: input, shape index: {}]   ;;  %s1663_s10 = inlined_call_operand.vmem [shape: f32[1,128], index: 10, kind: input, shape index: {}]   ;;  %s1664_s11 = inlined_call_operand.hbm [shape: bf16[128,128], index: 11, kind: input, shape index: {}]   ;;  %s1665_s12 = inlined_call_operand.vmem [shape: f32[1,128], index: 12, kind: input, shape index: {}]   ;;  %s1666_s13 = inlined_call_operand.hbm [shape: bf16[128,128], index: 13, kind: input, shape index: {}]   ;;  %s1667_s14 = inlined_call_operand.hbm [shape: bf16[128,128], index: 14, kind: input, shape index: {}]   ;;  %s1668_s15 = inlined_call_operand.vmem [shape: f32[1,128], index: 15, kind: input, shape index: {}]   ;;  %s1669_s16 = inlined_call_operand.hbm [shape: f32[8,128], index: 16, kind: output, shape index: {}]  }
   0x1   :  { %1670 = sst [smem:[#allocation27_spill]] %s1653_s0 }
   0x2   :  { %21 = vsyncpa [#allocation3], 0 }
   0x3   :  { %22 = vsyncpa [#allocation6], 0 }
   0x4   :  { %23 = vsyncpa [#allocation9], 0 }
   0x5   :  { %24 = vsyncpa [#allocation12], 0 }
   0x6   :  { %25 = vsyncpa [#allocation15], 0 }
   0x7   :  { %26 = vsyncpa [#allocation18], 0  ;;  %s43_s23 = sshll.u32 %s1654_s1, 4  ;;  %s44_s23 = int_to_ptr.hbm [resolvable:$true] %s43_s23 }
   0x8   :  { %27 = vsyncpa [#allocation4], 0  ;;  %s1475_s24 = smov [#allocation5]   ;;  %s71_s28 = sshll.u32 %s1657_s4, 4  ;;  %s72_s28 = int_to_ptr.hbm [resolvable:$true] %s71_s28 }
   0x9   :  { %s45_s25 = sshll.u32 %s1475_s24, 4  ;;  %s1476_s29 = smov 64   ;;  %s46_s25 = int_to_ptr.vmem [resolvable:$true] %s45_s25 }
   0xa   :  { %s1477_s30 = smov 4   ;;  %s1478_s0 = smov [#allocation8]  }
   0xb   :  { %51 = dma.hbm_to_vmem [thread:$0]  %s44_s23, 256, %s46_s25, [#allocation6], %s1476_s29, %s1476_s29, %s1477_s30  }
   0xc   :  { %s73_s17 = sshll.u32 %s1478_s0, 4  ;;  %s101_s19 = sshll.u32 %s1661_s8, 4  ;;  %s74_s17 = int_to_ptr.vmem [resolvable:$true] %s73_s17  ;;  %s102_s19 = int_to_ptr.hbm [resolvable:$true] %s101_s19 }
   0xd   :  { %79 = dma.hbm_to_vmem [thread:$0]  %s72_s28, 1024, %s74_s17, [#allocation9], %s1476_s29, %s1476_s29, %s1477_s30  }
   0xe   :  { %s129_s21 = sshll.u32 %s1664_s11, 4  ;;  %s1479_s22 = smov [#allocation11]   ;;  %s130_s21 = int_to_ptr.hbm [resolvable:$true] %s129_s21 }
   0xf   :  { %s103_s24 = sshll.u32 %s1479_s22, 4  ;;  %s1480_s23 = smov [#allocation14]   ;;  %s104_s24 = int_to_ptr.vmem [resolvable:$true] %s103_s24 }
  0x10   :  { %109 = dma.hbm_to_vmem [thread:$0]  %s102_s19, 1024, %s104_s24, [#allocation12], %s1476_s29, %s1476_s29, %s1477_s30  }
  0x11   :  { %s131_s8 = sshll.u32 %s1480_s23, 4  ;;  %s1671_s27 = sld [smem:[#allocation27_spill]]  ;;  %s132_s8 = int_to_ptr.vmem [resolvable:$true] %s131_s8 }
  0x12   :  { %137 = dma.hbm_to_vmem [thread:$0]  %s130_s21, 1024, %s132_s8, [#allocation15], %s1476_s29, %s1476_s29, %s1477_s30  }
  0x13   :  { %s58_s17 = sshll.u32 %s1656_s3, 4  ;;  %s1481_s18 = smov [#allocation2]   ;;  %s59_s17 = int_to_ptr.hbm [resolvable:$true] %s58_s17 }
  0x14   :  { %s35_s1 = sshll.u32 %s1481_s18, 4  ;;  %s1482_s19 = smov [#allocation7]   ;;  %s36_s1 = int_to_ptr.vmem [resolvable:$true] %s35_s1 }
  0x15   :  { %s60_s4 = sshll.u32 %s1482_s19, 4  ;;  %s86_s24 = sshll.u32 %s1659_s6, 4  ;;  %s61_s4 = int_to_ptr.vmem [resolvable:$true] %s60_s4  ;;  %s87_s24 = int_to_ptr.hbm [resolvable:$true] %s86_s24 }
  0x16   :  { %66 = dma.hbm_to_vmem [thread:$0]  %s59_s17, 256, %s61_s4, [#allocation6], %s1476_s29, %s1476_s29, %s1477_s30  }
  0x17   :  { %s33_s0 = sshll.u32 %s1671_s27, 4  ;;  %s114_s3 = sshll.u32 %s1662_s9, 4  ;;  %s34_s0 = int_to_ptr.hbm [resolvable:$true] %s33_s0  ;;  %s115_s3 = int_to_ptr.hbm [resolvable:$true] %s114_s3 }
  0x18   :  { %38 = dma.hbm_to_vmem [thread:$0]  %s34_s0, 64, %s36_s1, [#allocation3]  }
  0x19   :  { %s1483_s8 = smov [#allocation10]   ;;  %s1484_s26 = smov [#allocation13]  }
  0x1a   :  { %s88_s25 = sshll.u32 %s1483_s8, 4  ;;  %s116_s6 = sshll.u32 %s1484_s26, 4  ;;  %s89_s25 = int_to_ptr.vmem [resolvable:$true] %s88_s25  ;;  %s117_s6 = int_to_ptr.vmem [resolvable:$true] %s116_s6 }
  0x1b   :  { %94 = dma.hbm_to_vmem [thread:$0]  %s87_s24, 1024, %s89_s25, [#allocation9], %s1476_s29, %s1476_s29, %s1477_s30  }
  0x1c   :  { %s144_s11 = sshll.u32 %s1666_s13, 4  ;;  %s157_s17 = sshll.u32 %s1667_s14, 4  ;;  %s145_s11 = int_to_ptr.hbm [resolvable:$true] %s144_s11  ;;  %s158_s17 = int_to_ptr.hbm [resolvable:$true] %s157_s17 }
  0x1d   :  { %122 = dma.hbm_to_vmem [thread:$0]  %s115_s3, 1024, %s117_s6, [#allocation12], %s1476_s29, %s1476_s29, %s1477_s30  }
  0x1e   :  { %s1485_s18 = smov [#allocation16]   ;;  %s1486_s19 = smov [#allocation17]  }
  0x1f   :  { %s146_s1 = sshll.u32 %s1485_s18, 4  ;;  %s159_s13 = sshll.u32 %s1486_s19, 4  ;;  %s147_s1 = int_to_ptr.vmem [resolvable:$true] %s146_s1  ;;  %s160_s13 = int_to_ptr.vmem [resolvable:$true] %s159_s13 }
  0x20   :  { %152 = dma.hbm_to_vmem [thread:$0]  %s145_s11, 1024, %s147_s1, [#allocation15], %s1476_s29, %s1476_s29, %s1477_s30  }
  0x21   :  { %165 = dma.hbm_to_vmem [thread:$0]  %s158_s17, 1024, %s160_s13, [#allocation18], %s1476_s29, %s1476_s29, %s1477_s30  }
  0x22   :  { %1461 = dma.done.wait [#allocation3], 64  }
  0x23   :  { %1462 = vsyncadd [#allocation3], 4294967232 }
  0x24   :  { %1463 = dma.done.wait [#allocation6], 512  }
  0x25   :  { %1464 = vsyncadd [#allocation6], 4294966784 }
  0x26   :  { %1465 = dma.done.wait [#allocation9], 2048  }
  0x27   :  { %1466 = vsyncadd [#allocation9], 4294965248 }
  0x28   :  { %1467 = dma.done.wait [#allocation12], 2048  }
  0x29   :  { %1468 = vsyncadd [#allocation12], 4294965248 }
  0x2a   :  { %1469 = dma.done.wait [#allocation15], 2048  }
  0x2b   :  { %1470 = vsyncadd [#allocation15], 4294965248 }
  0x2c   :  { %1471 = dma.done.wait [#allocation18], 1024  }
  0x2d   :  { %1472 = vsyncadd [#allocation18], 4294966272  ;;  %v1119_v0 = vld [vmem:[#allocation5 + $0x8] sm:$0xff]  ;;  %v1129_v1 = vld [vmem:[#allocation8 + $0x38] sm:$0xff]  ;;  %vm230_vm0 = vcmask 261120   ;;  %s1487_s23 = smov [#allocation19]  }
  0x2e   :  { %240 = vmatpush.bf16.msra.mxu2 %v1119_v0  ;;  %v1118_v2 = vld [vmem:[#allocation5] sm:$0xff]  ;;  %v1121_v3 = vld [vmem:[#allocation7 + $0x8] sm:$0xff]  ;;  %318 = vmatpush.bf16.msra.mxu1 %v1129_v1  ;;  %v1128_v4 = vld [vmem:[#allocation8 + $0x30] sm:$0xff]  ;;  %s859_s3 = sshll.u32 %s1487_s23, 4  ;;  %s861_s26 = sshll.u32 %s1669_s16, 4  ;;  %s860_s3 = int_to_ptr.vmem [resolvable:$true] %s859_s3  ;;  %s862_s26 = int_to_ptr.hbm [resolvable:$true] %s861_s26 }
  0x2f   :  { %v209_v5 = vld [vmem:[#allocation2] sm:$0xf]  ;;  %v1120_v6 = vld [vmem:[#allocation7] sm:$0xff]  ;;  %v1127_v7 = vld [vmem:[#allocation8 + $0x28] sm:$0xff] }
  0x30   :  { %v1145_v8 = vld [vmem:[#allocation11 + $0x38] sm:$0xff]  ;;  %v1126_v9 = vld [vmem:[#allocation8 + $0x20] sm:$0xff]  ;;  %v1144_v10 = vld [vmem:[#allocation11 + $0x30] sm:$0xff] }
  0x31   :  { %v1125_v11 = vld [vmem:[#allocation8 + $0x18] sm:$0xff]  ;;  %v1143_v12 = vld [vmem:[#allocation11 + $0x28] sm:$0xff]  ;;  %v1124_v13 = vld [vmem:[#allocation8 + $0x10] sm:$0xff] }
  0x32   :  { %241 = vmatpush.bf16.msra.mxu2 %v1118_v2  ;;  %319 = vmatpush.bf16.msra.mxu1 %v1128_v4  ;;  %v1142_v14 = vld [vmem:[#allocation11 + $0x20] sm:$0xff]  ;;  %v1141_v15 = vld [vmem:[#allocation11 + $0x18] sm:$0xff]  ;;  %v1140_v16 = vld [vmem:[#allocation11 + $0x10] sm:$0xff] }
  0x33   :  { %v1123_v17 = vld [vmem:[#allocation8 + $0x8] sm:$0xff]  ;;  %v1122_v19 = vld [vmem:[#allocation8] sm:$0xff]  ;;  %v1137_v21 = vld [vmem:[#allocation10 + $0x38] sm:$0xff] }
  0x34   :  { %v1139_v18 = vld [vmem:[#allocation11 + $0x8] sm:$0xff]  ;;  %v1138_v20 = vld [vmem:[#allocation11] sm:$0xff]  ;;  %432 = vmatpush.bf16.msra.mxu3 %v1137_v21  ;;  %v1136_v22 = vld [vmem:[#allocation10 + $0x30] sm:$0xff] }
  0x35   :  { %884 = vmatmul.msk.bf16.vlgmr.msra.gmra.mxu2 %vm230_vm0, %v209_v5  ;;  %v1135_v23 = vld [vmem:[#allocation10 + $0x28] sm:$0xff]  ;;  %v1134_v24 = vld [vmem:[#allocation10 + $0x20] sm:$0xff]  ;;  %v1133_v25 = vld [vmem:[#allocation10 + $0x18] sm:$0xff] }
  0x36   :  { %349 = vmatpush.bf16.msrb.mxu2 %v1121_v3  ;;  %320 = vmatpush.bf16.msra.mxu1 %v1127_v7  ;;  %v1191_v26 = vld [vmem:[%s1655_s2] ss:$0 sm:$0xff]  ;;  %v1132_v35 = vld [vmem:[#allocation10 + $0x10] sm:$0xff]  ;;  %v1131_v36 = vld [vmem:[#allocation10 + $0x8] sm:$0xff] }
  0x37   :  { %v1130_v37 = vld [vmem:[#allocation10] sm:$0xff]  ;;  %v1153_v38 = vld [vmem:[#allocation13 + $0x38] sm:$0xff]  ;;  %v1152_v39 = vld [vmem:[#allocation13 + $0x30] sm:$0xff] }
  0x38   :  { %433 = vmatpush.bf16.msra.mxu3 %v1136_v22  ;;  %528 = vmatpush.bf16.msra.mxu0 %v1153_v38  ;;  %v1151_v40 = vld [vmem:[#allocation13 + $0x28] sm:$0xff]  ;;  %v1150_v41 = vld [vmem:[#allocation13 + $0x20] sm:$0xff]  ;;  %v1149_v42 = vld [vmem:[#allocation13 + $0x18] sm:$0xff] }
  0x39   :  { %v1192_v43 = vld [vmem:[%s1658_s5] ss:$0 sm:$0xff]  ;;  %v1148_v45 = vld [vmem:[#allocation13 + $0x10] sm:$0xff]  ;;  %v1147_v48 = vld [vmem:[#allocation13 + $0x8] sm:$0xff] }
  0x3a   :  { %350 = vmatpush.bf16.msrb.mxu2 %v1120_v6  ;;  %321 = vmatpush.bf16.msra.mxu1 %v1126_v9  ;;  %v1146_v53 = vld [vmem:[#allocation13] sm:$0xff]  ;;  %v1169_v55 = vld [vmem:[#allocation16 + $0x38] sm:$0xff]  ;;  %v1168_v56 = vld [vmem:[#allocation16 + $0x30] sm:$0xff] }
  0x3b   :  { %v1167_v58 = vld [vmem:[#allocation16 + $0x28] sm:$0xff]  ;;  %v1166_v59 = vld [vmem:[#allocation16 + $0x20] sm:$0xff]  ;;  %v1165_v60 = vld [vmem:[#allocation16 + $0x18] sm:$0xff] }
  0x3c   :  { %434 = vmatpush.bf16.msra.mxu3 %v1135_v23  ;;  %529 = vmatpush.bf16.msra.mxu0 %v1152_v39  ;;  %v1164_v61 = vld [vmem:[#allocation16 + $0x10] sm:$0xff]  ;;  %v1163_v62 = vld [vmem:[#allocation16 + $0x8] sm:$0xff]  ;;  %v1162_v63 = vld [vmem:[#allocation16] sm:$0xff] }
  0x3d   :  { %v1161_v0 = vld [vmem:[#allocation14 + $0x38] sm:$0xff]  ;;  %v1160_v1 = vld [vmem:[#allocation14 + $0x30] sm:$0xff]  ;;  %v1159_v3 = vld [vmem:[#allocation14 + $0x28] sm:$0xff] }
  0x3e   :  { %589 = vmatpush.bf16.msra.mxu2 %v1145_v8  ;;  %322 = vmatpush.bf16.msra.mxu1 %v1125_v11  ;;  %v1193_v2 = vld [vmem:[%s1660_s7] ss:$0 sm:$0xff]  ;;  %v1158_v7 = vld [vmem:[#allocation14 + $0x20] sm:$0xff] }
  0x3f   :  { %v1174_v21 = vld [vmem:[#allocation17 + $0x20] sm:$0xff] }
  0x40   :  { %435 = vmatpush.bf16.msra.mxu3 %v1134_v24  ;;  %530 = vmatpush.bf16.msra.mxu0 %v1151_v40  ;;  %v1173_v24 = vld [vmem:[#allocation17 + $0x18] sm:$0xff] }
  0x41   :  { %v1196_v40 = vld [vmem:[%s1668_s15] ss:$0 sm:$0xff] }
  0x42   :  { %590 = vmatpush.bf16.msra.mxu2 %v1144_v10  ;;  %323 = vmatpush.bf16.msra.mxu1 %v1124_v13  ;;  %v1157_v10 = vld [vmem:[#allocation14 + $0x18] sm:$0xff]  ;;  %v1155_v13 = vld [vmem:[#allocation14 + $0x8] sm:$0xff] }
  0x44   :  { %436 = vmatpush.bf16.msra.mxu3 %v1133_v25  ;;  %531 = vmatpush.bf16.msra.mxu0 %v1150_v41 }
  0x45   :  { %925 = vmatmul.msk.bf16.vlgmr.msrb.gmra.mxu2 %vm230_vm0, %v209_v5 }
  0x46   :  { %591 = vmatpush.bf16.msra.mxu2 %v1143_v12  ;;  %324 = vmatpush.bf16.msra.mxu1 %v1123_v17  ;;  %v1156_v12 = vld [vmem:[#allocation14 + $0x10] sm:$0xff]  ;;  %v1175_v17 = vld [vmem:[#allocation17 + $0x28] sm:$0xff] }
  0x48   :  { %437 = vmatpush.bf16.msra.mxu3 %v1132_v35  ;;  %532 = vmatpush.bf16.msra.mxu0 %v1149_v42 }
  0x4a   :  { %592 = vmatpush.bf16.msra.mxu2 %v1142_v14  ;;  %325 = vmatpush.bf16.msra.mxu1 %v1122_v19  ;;  %v1154_v14 = vld [vmem:[#allocation14] sm:$0xff] }
  0x4c   :  { %438 = vmatpush.bf16.msra.mxu3 %v1131_v36  ;;  %533 = vmatpush.bf16.msra.mxu0 %v1148_v45 }
  0x4e   :  { %593 = vmatpush.bf16.msra.mxu2 %v1141_v15  ;;  %678 = vmatpush.bf16.msrb.mxu1 %v1161_v0  ;;  %v1177_v15 = vld [vmem:[#allocation17 + $0x38] sm:$0xff] }
  0x50   :  { %439 = vmatpush.bf16.msra.mxu3 %v1130_v37  ;;  %534 = vmatpush.bf16.msra.mxu0 %v1147_v48 }
  0x52   :  { %594 = vmatpush.bf16.msra.mxu2 %v1140_v16  ;;  %679 = vmatpush.bf16.msrb.mxu1 %v1160_v1  ;;  %v1176_v16 = vld [vmem:[#allocation17 + $0x30] sm:$0xff] }
  0x54   :  { %535 = vmatpush.bf16.msra.mxu0 %v1146_v53  ;;  %774 = vmatpush.bf16.msrb.mxu3 %v1177_v15 }
  0x56   :  { %595 = vmatpush.bf16.msra.mxu2 %v1139_v18  ;;  %680 = vmatpush.bf16.msrb.mxu1 %v1159_v3  ;;  %v1194_v18 = vld [vmem:[%s1663_s10] ss:$0 sm:$0xff] }
  0x58   :  { %835 = vmatpush.bf16.msrb.mxu0 %v1169_v55  ;;  %775 = vmatpush.bf16.msrb.mxu3 %v1176_v16 }
  0x5a   :  { %596 = vmatpush.bf16.msra.mxu2 %v1138_v20  ;;  %681 = vmatpush.bf16.msrb.mxu1 %v1158_v7 }
  0x5c   :  { %836 = vmatpush.bf16.msrb.mxu0 %v1168_v56  ;;  %776 = vmatpush.bf16.msrb.mxu3 %v1175_v17 }
  0x5e   :  { %682 = vmatpush.bf16.msrb.mxu1 %v1157_v10 }
  0x60   :  { %837 = vmatpush.bf16.msrb.mxu0 %v1167_v58  ;;  %777 = vmatpush.bf16.msrb.mxu3 %v1174_v21 }
  0x62   :  { %683 = vmatpush.bf16.msrb.mxu1 %v1156_v12 }
  0x64   :  { %838 = vmatpush.bf16.msrb.mxu0 %v1166_v59  ;;  %778 = vmatpush.bf16.msrb.mxu3 %v1173_v24 }
  0x66   :  { %684 = vmatpush.bf16.msrb.mxu1 %v1155_v13 }
  0x68   :  { %839 = vmatpush.bf16.msrb.mxu0 %v1165_v60 }
  0x6a   :  { %685 = vmatpush.bf16.msrb.mxu1 %v1154_v14 }
  0x6c   :  { %840 = vmatpush.bf16.msrb.mxu0 %v1164_v61 }
  0x70   :  { %841 = vmatpush.bf16.msrb.mxu0 %v1163_v62 }
  0x74   :  { %842 = vmatpush.bf16.msrb.mxu0 %v1162_v63 }
  0xb8   :  { %v243_v27 = vpop.f32.mrf.mxu2 }
  0xb9   :  { %v244_v28 = vadd.f32 %v1191_v26, %v243_v27 }
  0xbb   :  { %v247_v29 = vmul.f32 0.01, %v244_v28 }
  0xbd   :  { %v248_v30 = vmax.f32 %v244_v28, %v247_v29  ;;  %v1172_v28 = vld [vmem:[#allocation17 + $0x10] sm:$0xff] }
  0xbe   :  { %779 = vmatpush.bf16.msrb.mxu3 %v1172_v28 }
  0xbf   :  { %v249_v31 = vpack.c.bf16 %v248_v30, %v248_v30 }
  0xc0   :  { %v245_v32 = vpop.f32.mrf.mxu2 }
  0xc1   :  { %326 = vmatmul.bf16.vlgmr.msra.gmra.mxu1 %v249_v31  ;;  %597 = vmatmul.bf16.vlgmr.msra.gmra.mxu2 %v249_v31  ;;  %v1171_v31 = vld [vmem:[#allocation17 + $0x8] sm:$0xff]  ;;  %v1170_v32 = vld [vmem:[#allocation17] sm:$0xff] }
  0xc2   :  { %780 = vmatpush.bf16.msrb.mxu3 %v1171_v31 }
  0xc6   :  { %781 = vmatpush.bf16.msrb.mxu3 %v1170_v32 }
  0xc8   :  { %v352_v33 = vpop.f32.mrf.mxu2 }
  0xd0   :  { %v354_v34 = vpop.f32.mrf.mxu2 }
 0x13e   :  { %v327_v44 = vpop.f32.mrf.mxu1 }
 0x13f   :  { %v353_v46 = vadd.f32 %v352_v33, %v327_v44  ;;  %v1195_v33 = vld [vmem:[%s1665_s12] ss:$0 sm:$0xff] }
 0x141   :  { %v360_v47 = vadd.f32 %v1192_v43, %v353_v46 }
 0x143   :  { %v361_v49 = vmul.f32 0.01, %v360_v47 }
 0x144   :  { %v598_v50 = vpop.f32.mrf.mxu2 }
 0x145   :  { %v362_v51 = vmax.f32 %v360_v47, %v361_v49 }
 0x146   :  { %v329_v52 = vpop.f32.mrf.mxu1 }
 0x147   :  { %v363_v54 = vpack.c.bf16 %v362_v51, %v362_v51 }
 0x149   :  { %440 = vmatmul.bf16.vlgmr.msra.gmra.mxu3 %v363_v54 }
 0x14c   :  { %v600_v57 = vpop.f32.mrf.mxu2 }
 0x1cc   :  { %v441_v4 = vpop.f32.mrf.mxu3 }
 0x1cd   :  { %v442_v5 = vadd.f32 %v1193_v2, %v441_v4 }
 0x1cf   :  { %v445_v6 = vmul.f32 0.01, %v442_v5 }
 0x1d1   :  { %v446_v8 = vmax.f32 %v442_v5, %v445_v6 }
 0x1d3   :  { %v447_v9 = vpack.c.bf16 %v446_v8, %v446_v8 }
 0x1d4   :  { %v443_v11 = vpop.f32.mrf.mxu3 }
 0x1d5   :  { %536 = vmatmul.bf16.vlgmr.msra.gmra.mxu0 %v447_v9 }
 0x1e5   :  { %843 = vmatmul.bf16.vlgmr.msrb.gmra.mxu0 %v447_v9 }
 0x252   :  { %v537_v19 = vpop.f32.mrf.mxu0 }
 0x253   :  { %v599_v20 = vadd.f32 %v598_v50, %v537_v19 }
 0x255   :  { %v606_v22 = vadd.f32 %v1194_v18, %v599_v20 }
 0x257   :  { %v607_v23 = vmul.f32 0.01, %v606_v22 }
 0x259   :  { %v608_v25 = vmax.f32 %v606_v22, %v607_v23 }
 0x25a   :  { %v539_v26 = vpop.f32.mrf.mxu0 }
 0x25b   :  { %v609_v27 = vpack.c.bf16 %v608_v25, %v608_v25 }
 0x25d   :  { %686 = vmatmul.bf16.vlgmr.msrb.gmra.mxu1 %v609_v27 }
 0x262   :  { %v844_v29 = vpop.f32.mrf.mxu0 }
 0x26a   :  { %v846_v30 = vpop.f32.mrf.mxu0 }
 0x2da   :  { %v687_v34 = vpop.f32.mrf.mxu1 }
 0x2db   :  { %v688_v35 = vadd.f32 %v1195_v33, %v687_v34 }
 0x2dd   :  { %v691_v36 = vmul.f32 0.01, %v688_v35 }
 0x2df   :  { %v692_v37 = vmax.f32 %v688_v35, %v691_v36 }
 0x2e1   :  { %v693_v38 = vpack.c.bf16 %v692_v37, %v692_v37 }
 0x2e2   :  { %v689_v39 = vpop.f32.mrf.mxu1 }
 0x2e3   :  { %782 = vmatmul.bf16.vlgmr.msrb.gmra.mxu3 %v693_v38 }
 0x366   :  { %v783_v41 = vpop.f32.mrf.mxu3 }
 0x367   :  { %v845_v42 = vadd.f32 %v844_v29, %v783_v41 }
 0x369   :  { %v852_v43 = vadd.f32 %v1196_v40, %v845_v42 }
 0x36b   :  { %853 = vst [vmem:[#allocation19] sm:$0xff] %v852_v43 }
 0x36c   :  { %864 = dma.vmem_to_hbm [thread:$0]  %s860_s3, 128, %s862_s26, [#allocation4]  }
 0x36e   :  { %v785_v44 = vpop.f32.mrf.mxu3 }
 0x36f   :  { %1473 = dma.done.wait [#allocation4], 128  }
 0x370   :  { %1474 = vsyncadd [#allocation4], 4294967168 }
 0x371   :  { %869 = vsyncpa [#allocation3], 1 }
 0x372   :  { %870 = vsyncpa [#allocation6], 1 }
 0x373   :  { %871 = vsyncpa [#allocation9], 1 }
 0x374   :  { %872 = vsyncpa [#allocation12], 1 }
 0x375   :  { %873 = vsyncpa [#allocation15], 1 }
 0x376   :  { %874 = vsyncpa [#allocation18], 1 }
 0x377   :  { %875 = vsyncpa [#allocation4], 1 }

</bundles_post_ra>
